<compile_context>
chip_gen: v7x
topology: tpu7x:2x2x1
jax: 0.10.0
libtpu: 0.0.40
codegen_flags: <defaults>
</compile_context>

<pallas_src>
import functools

import jax
import jax.numpy as jnp
from jax.experimental import pallas as pl
from jax.experimental.pallas import tpu as pltpu


def _dilated_inception_kernel(x_ref, w_ref, b_ref, o_ref, *, shift, tile_b, fuse_taps):
    """One grid step: tile_b samples of (Cin, Lc) lane-flattened (node,time) columns.

    x_ref : (tile_b, Cin, Lc)   activations (compute dtype, e.g. bf16)
    w_ref : (Cout, 2*Cin) if fuse_taps else (2, Cout, Cin)
    b_ref : (Cout, 1) float32
    o_ref : (tile_b, Cout, Lc)
    """
    def one_sample(i):
        x = x_ref[i]                                # (Cin, Lc)
        # Tap at t+dilation via lane rotation (XLU slot; hides under MXU/DMA).
        # Wrapped lanes only feed the per-row dead columns the wrapper slices off.
        x_shift = pltpu.roll(x, shift, axis=1)      # (Cin, Lc)
        if fuse_taps:
            # Single MXU matmul with contraction depth K = 2*Cin.
            x_cat = jnp.concatenate([x, x_shift], axis=0)            # (2*Cin, Lc)
            acc = jnp.dot(w_ref[...], x_cat, preferred_element_type=jnp.float32)
        else:
            acc = jnp.dot(w_ref[0], x, preferred_element_type=jnp.float32)
            acc = acc + jnp.dot(w_ref[1], x_shift, preferred_element_type=jnp.float32)
        o_ref[i] = (acc + b_ref[...]).astype(o_ref.dtype)            # bias add in f32

    if tile_b == 1:
        one_sample(0)
    else:
        def body(i, carry):
            one_sample(i)
            return carry
        jax.lax.fori_loop(0, tile_b, body, 0)


def _vmem_capacity_bytes():
    try:
        return int(pltpu.get_tpu_info().vmem_capacity_bytes)
    except Exception:
        return 64 << 20     # conservative: v7x has the smallest VMEM (64 MiB per TC)


def _pick_tiles(B, Cin, Cout, H, W, in_bytes, out_bytes, budget):
    """Pick (tile_b, tile_h).  Footprint counts double-buffered input/output blocks
    plus in-kernel temps (roll output, concat, f32 accumulator)."""
    def footprint(tb, th):
        lc = th * W
        in_blk = tb * Cin * lc * in_bytes
        out_blk = tb * Cout * lc * out_bytes
        temps = (3 * Cin * in_bytes + Cout * 4) * lc   # x_shift + x_cat + f32 acc
        return 2 * in_blk + 2 * out_blk + temps

    # Row-aligned lane blocks: multiple of 128 lanes, or the full flattened axis.
    cands = [th for th in range(1, H + 1)
             if H % th == 0 and ((th * W) % 128 == 0 or th == H)]
    fitting = [th for th in cands if footprint(1, th) <= budget]
    if fitting:
        tile_h = max(fitting)
        # Prefer 256-aligned lanes (v6e/v7x MXU result tile) unless it costs >2x size.
        al256 = [th for th in fitting if (th * W) % 256 == 0]
        if al256 and 2 * max(al256) >= tile_h:
            tile_h = max(al256)
    else:
        tile_h = min(cands)

    # If per-sample blocks are tiny (step overhead dominates), fold batch samples into
    # one grid step, but keep >= 2 grid steps so both v7x TensorCores stream.
    tile_b = 1
    if tile_h == H:
        while (footprint(tile_b, tile_h) < (4 << 20)
               and 2 * tile_b <= B and B % (2 * tile_b) == 0
               and footprint(2 * tile_b, tile_h) <= budget
               and (B // (2 * tile_b)) * (H // tile_h) >= 2):
            tile_b *= 2
    return tile_b, tile_h


def dilated_inception_forward(x, branch_weights, branch_biases, dilation_factor=2,
                              compute_dtype=jnp.bfloat16, out_dtype=None):
    """x: (B, Cin, H, W) NCHW.  Returns (B, Cout, H, W - dilation_factor)."""
    B, Cin, H, W = x.shape
    kern = 2                                   # kernel_set = [2, 2, 2, 2]
    t_out = W - dilation_factor * (kern - 1)
    assert t_out > 0, "input time dim too short for the dilated kernel"
    if out_dtype is None:
        out_dtype = x.dtype

    # torch.cat(dim=1) over the 4 branches.
    w_all = jnp.concatenate(branch_weights, axis=0)     # (Cout, Cin, 1, 2)
    b_all = jnp.concatenate(branch_biases, axis=0)      # (Cout,)
    Cout = w_all.shape[0]
    w0 = w_all[:, :, 0, 0]                              # tap at t
    w1 = w_all[:, :, 0, 1]                              # tap at t + d
    b2d = b_all.reshape(Cout, 1).astype(jnp.float32)    # bias / accumulation stay f32

    in_bytes = jnp.dtype(compute_dtype).itemsize
    out_bytes = jnp.dtype(out_dtype).itemsize

    # Fused single-matmul path needs the in-kernel sublane concat to be aligned to the
    # native tile (8 rows f32 / 16 rows bf16); otherwise two dots on a (2,Cout,Cin)
    # weight block (still a single resident weight block / DMA stream).
    fuse_taps = Cin % ((8 * 4) // in_bytes) == 0
    if fuse_taps:
        w_in = jnp.concatenate([w0, w1], axis=1).astype(compute_dtype)   # (Cout, 2*Cin)
        w_spec = pl.BlockSpec((Cout, 2 * Cin), lambda b, h: (0, 0))
    else:
        w_in = jnp.stack([w0, w1], axis=0).astype(compute_dtype)         # (2, Cout, Cin)
        w_spec = pl.BlockSpec((2, Cout, Cin), lambda b, h: (0, 0, 0))

    L = H * W
    x3 = x.reshape(B, Cin, L).astype(compute_dtype)   # free reshape; bf16 halves HBM read

    vmem_cap = _vmem_capacity_bytes()
    vmem_limit = max(min((vmem_cap * 3) // 4, 96 << 20), 32 << 20)
    tile_b, tile_h = _pick_tiles(B, Cin, Cout, H, W, in_bytes, out_bytes,
                                 budget=vmem_limit // 2)
    Lc = tile_h * W
    grid = (B // tile_b, H // tile_h)

    kernel = functools.partial(_dilated_inception_kernel,
                               shift=Lc - dilation_factor,
                               tile_b=tile_b, fuse_taps=fuse_taps)

    out3 = pl.pallas_call(
        kernel,
        out_shape=jax.ShapeDtypeStruct((B, Cout, L), out_dtype),
        grid_spec=pltpu.PrefetchScalarGridSpec(
            num_scalar_prefetch=0,
            grid=grid,
            in_specs=[
                # If profiling ever shows exposed DMA on tiny blocks, add
                # pipeline_mode=pl.Buffered(3) on this spec.
                pl.BlockSpec((tile_b, Cin, Lc), lambda b, h: (b, 0, h)),
                w_spec,
                pl.BlockSpec((Cout, 1), lambda b, h: (0, 0)),
            ],
            out_specs=pl.BlockSpec((tile_b, Cout, Lc), lambda b, h: (b, 0, h)),
        ),
        compiler_params=pltpu.CompilerParams(
            dimension_semantics=("parallel", "parallel"),
            vmem_limit_bytes=int(vmem_limit)),
    )(x3, w_in, b2d)

    # Drop the `dilation` dead columns per row (fed by the roll wrap).  Standalone this
    # is one extra output-sized copy; in a full model it fuses into the consumer.
    return out3.reshape(B, Cout, H, W)[..., :t_out]


def init_params(key, cin, cout, kernel_set=(2, 2, 2, 2)):
    """Deterministic synthetic params matching nn.Conv2d default init shapes."""
    cout_b = cout // len(kernel_set)
    weights, biases = [], []
    for kern in kernel_set:
        key, kw, kb = jax.random.split(key, 3)
        fan_in = cin * 1 * kern
        bound = 1.0 / jnp.sqrt(jnp.float32(fan_in))
        w = jax.random.uniform(kw, (cout_b, cin, 1, kern), jnp.float32, -bound, bound)
        b = jax.random.uniform(kb, (cout_b,), jnp.float32, -bound, bound)
        weights.append(w)
        biases.append(b)
    return weights, biases


def _reference(x, weights, biases, dilation=2, cast_dtype=None):
    """Pure-JAX reference of the PyTorch forward (optionally with inputs/weights
    rounded to the kernel's compute dtype for a tight comparison)."""
    if cast_dtype is not None:
        x = x.astype(cast_dtype).astype(jnp.float32)
        weights = [w.astype(cast_dtype).astype(jnp.float32) for w in weights]
    outs = []
    t_out = x.shape[-1] - dilation
    for w, b in zip(weights, biases):
        w0 = w[:, :, 0, 0]
        w1 = w[:, :, 0, 1]
        x0 = x[..., :t_out]
        x1 = x[..., dilation:dilation + t_out]
        y = (jnp.einsum('bchw,oc->bohw', x0, w0)
             + jnp.einsum('bchw,oc->bohw', x1, w1)
             + b[None, :, None, None])
        outs.append(y)
    return jnp.concatenate(outs, axis=1)


if __name__ == "__main__":
    root = jax.random.PRNGKey(0)

    def run_case(seed_key, B, Cin, Cout, H, W, compute_dtype, atol):
        kx, kp = jax.random.split(seed_key)
        x = jax.random.normal(kx, (B, Cin, H, W), jnp.float32)
        weights, biases = init_params(kp, Cin, Cout)
        fwd = jax.jit(functools.partial(dilated_inception_forward,
                                        dilation_factor=2,
                                        compute_dtype=compute_dtype))
        y = jax.block_until_ready(fwd(x, weights, biases))
        cast = None if compute_dtype == jnp.float32 else compute_dtype
        y_ref = _reference(x, weights, biases, dilation=2, cast_dtype=cast)
        assert y.shape == (B, Cout, H, W - 2), y.shape
        err = float(jnp.max(jnp.abs(y - y_ref)))
        assert err <= atol, (B, Cin, Cout, H, W, str(compute_dtype), err)
        return err

    k1, k2, k3 = jax.random.split(root, 3)

    # Spec shape, f32 compute (loose tol: MXU f32 pass precision varies by generation).
    run_case(k1, B=2, Cin=4, Cout=8, H=16, W=16, compute_dtype=jnp.float32, atol=2e-2)
    # Spec shape, bf16 I/O + f32 accumulation (two-dot path: Cin too small to fuse).
    run_case(k1, B=2, Cin=4, Cout=8, H=16, W=16, compute_dtype=jnp.bfloat16, atol=2e-3)
    # Fused single K=2*Cin matmul path (Cin aligned for the bf16 sublane concat).
    run_case(k2, B=2, Cin=16, Cout=32, H=8, W=16, compute_dtype=jnp.bfloat16, atol=2e-3)
    # Batch-folded path (W not lane-aligned, tiny per-sample L -> tile_b > 1).
    run_case(k3, B=8, Cin=4, Cout=8, H=4, W=16, compute_dtype=jnp.bfloat16, atol=2e-3)

    print("KERNEL_OK")
</pallas_src>

<mosaic_0001>
module attributes {stable_mosaic.version = 11 : i64} {
  func.func @_dilated_inception_kernel(%arg0: i32, %arg1: i32, %arg2: memref<1x4x256xf32, #tpu.memory_space<vmem>>, %arg3: memref<2x8x4xf32, #tpu.memory_space<vmem>>, %arg4: memref<8x1xf32, #tpu.memory_space<vmem>>, %arg5: memref<1x8x256xf32, #tpu.memory_space<vmem>>) attributes {dimension_semantics = [#tpu.dimension_semantics<parallel>, #tpu.dimension_semantics<parallel>], iteration_bounds = array<i64: 2, 1>, scalar_prefetch = 0 : i64, scratch_operands = 0 : i64, tpu.core_type = #tpu.core_type<tc>, window_params = [{transform_indices = @transform_0, window_bounds = array<i64: 1, 4, 256>}, {pipeline_mode = #tpu.pipeline_mode<synchronous>, transform_indices = @transform_1, window_bounds = array<i64: 2, 8, 4>}, {pipeline_mode = #tpu.pipeline_mode<synchronous>, transform_indices = @transform_2, window_bounds = array<i64: 8, 1>}, {transform_indices = @transform_3, window_bounds = array<i64: 1, 8, 256>}]} {
    %c0 = arith.constant 0 : index
    %c0_0 = arith.constant 0 : index
    %c0_1 = arith.constant 0 : index
    %0 = vector.load %arg2[%c0, %c0_0, %c0_1] : memref<1x4x256xf32, #tpu.memory_space<vmem>>, vector<1x4x256xf32>
    %1 = vector.shape_cast %0 : vector<1x4x256xf32> to vector<4x256xf32>
    %c254_i32 = arith.constant 254 : i32
    %2 = tpu.dynamic_rotate %1 by %c254_i32 dim 1 : vector<4x256xf32>, i32 -> vector<4x256xf32>
    %c0_2 = arith.constant 0 : index
    %c0_3 = arith.constant 0 : index
    %c0_4 = arith.constant 0 : index
    %3 = vector.load %arg3[%c0_2, %c0_3, %c0_4] : memref<2x8x4xf32, #tpu.memory_space<vmem>>, vector<1x8x4xf32>
    %4 = vector.shape_cast %3 : vector<1x8x4xf32> to vector<8x4xf32>
    %cst = arith.constant dense<0.000000e+00> : vector<8x256xf32>
    %5 = tpu.matmul %4, %1, %cst {dimension_numbers = #tpu.dot_dimension_numbers<[1], [0], [0], [1], [0, 0, 1, 1], [], []>} : vector<8x4xf32>, vector<4x256xf32>, vector<8x256xf32> -> vector<8x256xf32>
    %c1 = arith.constant 1 : index
    %c0_5 = arith.constant 0 : index
    %c0_6 = arith.constant 0 : index
    %6 = vector.load %arg3[%c1, %c0_5, %c0_6] : memref<2x8x4xf32, #tpu.memory_space<vmem>>, vector<1x8x4xf32>
    %7 = vector.shape_cast %6 : vector<1x8x4xf32> to vector<8x4xf32>
    %cst_7 = arith.constant dense<0.000000e+00> : vector<8x256xf32>
    %8 = tpu.matmul %7, %2, %cst_7 {dimension_numbers = #tpu.dot_dimension_numbers<[1], [0], [0], [1], [0, 0, 1, 1], [], []>} : vector<8x4xf32>, vector<4x256xf32>, vector<8x256xf32> -> vector<8x256xf32>
    %9 = arith.addf %5, %8 : vector<8x256xf32>
    %c0_8 = arith.constant 0 : index
    %c0_9 = arith.constant 0 : index
    %10 = vector.load %arg4[%c0_8, %c0_9] : memref<8x1xf32, #tpu.memory_space<vmem>>, vector<8x1xf32>
    %11 = vector.broadcast %10 : vector<8x1xf32> to vector<8x256xf32>
    %12 = arith.addf %9, %11 : vector<8x256xf32>
    %c0_10 = arith.constant 0 : index
    %c0_11 = arith.constant 0 : index
    %c0_12 = arith.constant 0 : index
    %13 = vector.load %arg5[%c0_10, %c0_11, %c0_12] : memref<1x8x256xf32, #tpu.memory_space<vmem>>, vector<1x8x256xf32>
    %14 = vector.shape_cast %13 : vector<1x8x256xf32> to vector<8x256xf32>
    %15 = vector.shape_cast %12 : vector<8x256xf32> to vector<1x8x256xf32>
    tpu.vector_store %arg5[%c0_10, %c0_11, %c0_12], %15 {strides = array<i32>} : memref<1x8x256xf32, #tpu.memory_space<vmem>>, vector<1x8x256xf32>,
    return
  }
  func.func @transform_0(%arg0: i32, %arg1: i32) -> (i32, i32, i32) {
    %c0_i32 = arith.constant 0 : i32
    %c0_i32_0 = arith.constant 0 : i32
    return %arg0, %c0_i32, %arg1 : i32, i32, i32
  }
  func.func @transform_1(%arg0: i32, %arg1: i32) -> (i32, i32, i32) {
    %c0_i32 = arith.constant 0 : i32
    %c0_i32_0 = arith.constant 0 : i32
    %c0_i32_1 = arith.constant 0 : i32
    %c0_i32_2 = arith.constant 0 : i32
    return %c0_i32, %c0_i32_0, %c0_i32_1 : i32, i32, i32
  }
  func.func @transform_2(%arg0: i32, %arg1: i32) -> (i32, i32) {
    %c0_i32 = arith.constant 0 : i32
    %c0_i32_0 = arith.constant 0 : i32
    %c0_i32_1 = arith.constant 0 : i32
    return %c0_i32, %c0_i32_0 : i32, i32
  }
  func.func @transform_3(%arg0: i32, %arg1: i32) -> (i32, i32, i32) {
    %c0_i32 = arith.constant 0 : i32
    %c0_i32_0 = arith.constant 0 : i32
    return %arg0, %c0_i32, %arg1 : i32, i32, i32
  }
}

</mosaic_0001>

<bundles_post_ra>
// kernel: dilated_inception_forward.1
= control target key start
LH: loop header
LB: loop body
LE: loop exit
PB: predicated region body
PF: predicated region fallthrough
CT: control target
= control target key end

     0   :  { %s582_s12 = smov 0   ;;  %s584_s13 = smov 0   ;;  %s632_s0 = inlined_call_operand.vmem [shape: f32[2,4,256], index: 0, kind: input, shape index: {}]   ;;  %s633_s1 = inlined_call_operand.vmem [shape: f32[2,8,4], index: 1, kind: input, shape index: {}]   ;;  %s634_s2 = inlined_call_operand.vmem [shape: f32[8,1], index: 2, kind: input, shape index: {}]   ;;  %s635_s3 = inlined_call_operand.vmem [shape: f32[2,8,256], index: 3, kind: output, shape index: {}]  }
   0x1   :  { %s586_s14 = smov 0  }
   0x2 LB: > { %s25_s15 = sadd.s32 1, %s553_s13  ;;  %p487_p0 = scmp.ge.s32.totalorder %s557_s14, 1  ;;  %s557_s14 = sphi %s586_s14, %s13_s14   ;;  %s553_s13 = sphi %s584_s13, %s637_s13   ;;  %s549_s12 = sphi %s582_s12, %s636_s12  }
   0x3   : > { %p27_p1 = scmp.ge.s32.totalorder %s25_s15, 2  ;;  %p158_p2 = scmp.lt.s32.totalorder %s557_s14, 3 }
   0x5   : > { %s639_s15 = smov (%p27_p1, %s25_s15), 0  ;;  %p159_p3 = pnand %p487_p0, %p158_p2 }
   0x6   : > { %p191_p4 = scmp.lt.s32.totalorder (!%p159_p3), %s549_s12, 1  ;;  %v559_v0 = vmov (!%p159_p3), 0.0   ;;  %v386_v1 = vld [vmem:[%s634_s2] sm:$0xff] (!%p159_p3)  ;;  %v560_v2 = vmov (!%p159_p3), 0   ;;  %vm230_vm0 = vcmask (!%p159_p3), 1043456   ;;  %s561_s22 = smov (!%p159_p3), 126   ;;  %v218_v6 = vlaneseq (!%p159_p3) }
   0x7   : > { %162 = sbr.rel (%p159_p3) target bundleno = 358 (0x166), region = 32  ;;  %379 = vmatprep.mubr.f32.mxu0 (!%p159_p3), %v559_v0  ;;  %301 = vmatprep.mubr.f32.mxu1 (!%p159_p3), %v559_v0  ;;  %v223_v5 = vld [vmem:[%s633_s1] sm:$0xff] (!%p159_p3)  ;;  %vm226_vm1 = vcmask (!%p159_p3), 31744   ;;  %v492_v12 = vld [vmem:[%s633_s1 + $0x8] sm:$0xff] (!%p159_p3) }
   0x8   : > { %532 = vset.pattern.permute.xlu1 (!%p159_p3), %v560_v2  ;;  %533 = vset.pattern.permute.xlu0 (!%p159_p3), %v560_v2  ;;  %v219_v7 = vand.u32 (!%p159_p3), 127, %v218_v6 }
   0x9   : > { %389 = vperm.xlu1 (!%p159_p3), %532, %v386_v1  }
   0xa   : > { %vm220_vm2 = vcmp.lt.s32.totalorder (!%p159_p3), %v219_v7, 126 }
   0xe   : > { %s641_s12 = smov (!%p191_p4, %s549_s12), 1 }
   0xf   : > { %s501_s18 = sshll.u32 %s641_s12, 3  ;;  %s502_s27 = sshll.u32 %s641_s12, 4 }
  0x10   : > { %s198_s21 = scalar_lea.vmem %s632_s0, %s501_s18  ;;  %s208_s30 = scalar_lea.vmem %s635_s3, %s502_s27 }
  0x11   : > { %v210_v3 = vld [vmem:[%s198_s21] sm:$0xff] }
  0x12   : > { %214 = vrot.lane.b32.xlu0 %v210_v3, %s561_s22  ;;  %v212_v4 = vcombine.high %v210_v3, %v210_v3 }
  0x14   : > { %496 = vmatprep.subr.msk.mxu0 %vm230_vm0, %v212_v4 }
  0x15   : > { %497 = vmatpush1.msk.msra.mxu0 %vm230_vm0, %v210_v3 }
  0x16   : > { %216 = vrot.lane.b32.xlu0 %v212_v4, %s561_s22  ;;  %498 = vmatmul.mubr.msk.f32.vlgmr.msra.gmra.mrb[0].mxu0 %vm226_vm1, %v223_v5 }
  0x84   : > { %v215_v8 = vpop.permute.xlu0 %214 }
  0x88   : > { %v217_v9 = vpop.permute.xlu0 %216  ;;  %v390_v16 = vpop.permute.xlu1 %389 }
  0x89   : > { %v222_v10 = vsel %vm220_vm2, %v217_v9, %v215_v8  ;;  %v221_v11 = vsel %vm220_vm2, %v215_v8, %v217_v9 }
  0x8a   : > { %493 = vmatprep.subr.msk.mxu1 %vm230_vm0, %v222_v10 }
  0x8b   : > { %494 = vmatpush1.msk.msra.mxu1 %vm230_vm0, %v221_v11 }
  0x8c   : > { %495 = vmatmul.mubr.msk.f32.vlgmr.msra.gmra.mrb[0].mxu1 %vm226_vm1, %v492_v12 }
  0xe9   : > { %v381_v13 = vpop.f32.mrb[0].mxu0 }
  0xea   : > { %v383_v14 = vpop.f32.mrb[1].mxu0 }
 0x15f   : > { %v303_v15 = vpop.f32.mrb[0].mxu1 }
 0x160   : > { %v382_v17 = vadd.f32 %v381_v13, %v303_v15  ;;  %v305_v18 = vpop.f32.mrb[1].mxu1 }
 0x161   : > { %v384_v19 = vadd.f32 %v383_v14, %v305_v18 }
 0x162   : > { %v392_v20 = vadd.f32 %v390_v16, %v382_v17 }
 0x163   : > { %v393_v21 = vadd.f32 %v390_v16, %v384_v19 }
 0x164   : > { %394 = vst [vmem:[%s208_s30] sm:$0xff] %v392_v20 }
 0x165   : > { %395 = vst [vmem:[%s208_s30 + $0x8] sm:$0xff] %v393_v21 }
 0x166 PF: > { %s13_s14 = sadd.s32 1, %s557_s14   ;;  %s636_s12 = smov %s553_s13 }
 0x167   : > { %p10_p5 = scmp.ge.s32.totalorder %s13_s14, 4   ;;  %s637_s13 = smov %s639_s15 }
 0x169   :  { %12 = sbr.rel (!%p10_p5) target bundleno = 2 (0x2), region = 63 }

</bundles_post_ra>
